<compile_context>
chip_gen: v7x
topology: tpu7x:2x2x1
jax: 0.10.0
libtpu: 0.0.40
codegen_flags: <defaults>
</compile_context>

<pallas_src>
import jax
import jax.numpy as jnp
from jax.experimental import pallas as pl
from jax.experimental.pallas import tpu as pltpu

LANES = 128
MAX_TILE_ROWS = 2048   # 2048 * 128 * 4 B = 1 MiB per f32 input tile
NUM_CORES = 2          # leading parallel grid axis (uses both TCs on v7x)


def _bce_kernel_factory(n_elems, tile_rows):
    # NOTE: linear index math is int32 -> assumes n_elems < 2**31.
    def kernel(pred_ref, label_ref, partial_ref, acc_ref):
        c = pl.program_id(0)
        k = pl.program_id(1)
        nk = pl.num_programs(1)

        @pl.when(k == 0)
        def _():
            acc_ref[...] = jnp.zeros_like(acc_ref)

        p = pred_ref[...].astype(jnp.float32)
        y = label_ref[...].astype(jnp.float32)

        # Clamp log terms at -100 (PyTorch BCELoss convention); also keeps
        # p in {0,1} and out-of-bounds garbage from producing inf.
        log_p = jnp.maximum(jnp.log(p), -100.0)
        log_1mp = jnp.maximum(jnp.log(1.0 - p), -100.0)
        loss = -(y * log_p + (1.0 - y) * log_1mp)

        # In-kernel validity mask from the linear element index (replaces the
        # third HBM mask stream). Tail steps whose block index was clamped in
        # the index_map get an all-false mask and contribute zero.
        block = c * nk + k
        base = block * (tile_rows * LANES)
        row = jax.lax.broadcasted_iota(jnp.int32, (tile_rows, LANES), 0)
        lane = jax.lax.broadcasted_iota(jnp.int32, (tile_rows, LANES), 1)
        valid = (base + row * LANES + lane) < n_elems
        masked = jnp.where(valid, loss, 0.0)

        # Fold (tile_rows, 128) -> (8, 128): pure vreg-wise VPU adds, no
        # per-step cross-lane reduce or scalar read-modify-write.
        acc_ref[...] += masked.reshape(tile_rows // 8, 8, LANES).sum(axis=0)

        @pl.when(k == nk - 1)
        def _():
            partial_ref[...] = acc_ref[...].reshape(1, 8, LANES)

    return kernel


def bce_loss(pred, label):
    """Mean binary cross-entropy, semantics of the PyTorch BCEloss module."""
    assert pred.shape == label.shape
    n_elems = pred.size

    pred_flat = jnp.ravel(pred)      # keep native dtype; cast happens in-kernel
    label_flat = jnp.ravel(label)

    # Only pad the small tail needed to reach a multiple of 128 lanes; when
    # n_elems % 128 == 0 (the common case) the reshape below is copy-free.
    rem = n_elems % LANES
    if rem:
        pad = LANES - rem
        pred_flat = jnp.pad(pred_flat, (0, pad), constant_values=0.5)
        label_flat = jnp.pad(label_flat, (0, pad), constant_values=0.0)

    rows = pred_flat.shape[0] // LANES
    pred2d = pred_flat.reshape(rows, LANES)
    label2d = label_flat.reshape(rows, LANES)

    # Tile rows: large (amortize per-step overhead) but always a multiple of 8
    # so the (8,128) block constraint and the in-kernel fold both hold.
    tile_rows = min(MAX_TILE_ROWS, ((rows + 7) // 8) * 8)
    nblocks = pl.cdiv(rows, tile_rows)
    steps_per_core = pl.cdiv(nblocks, NUM_CORES)

    def in_map(c, k):
        blk = c * steps_per_core + k
        # Clamp so a core's tail step never DMAs a fully out-of-bounds block;
        # those steps are zeroed by the in-kernel index mask.
        return (jnp.minimum(blk, nblocks - 1), 0)

    tile_spec = pl.BlockSpec((tile_rows, LANES), in_map)

    in_bytes = (jnp.dtype(pred.dtype).itemsize
                + jnp.dtype(label.dtype).itemsize) * n_elems

    partials = pl.pallas_call(
        _bce_kernel_factory(n_elems, tile_rows),
        out_shape=jax.ShapeDtypeStruct((NUM_CORES, 8, LANES), jnp.float32),
        grid_spec=pltpu.PrefetchScalarGridSpec(
            num_scalar_prefetch=0,
            grid=(NUM_CORES, steps_per_core),
            in_specs=[tile_spec, tile_spec],
            out_specs=pl.BlockSpec((1, 8, LANES), lambda c, k: (c, 0, 0)),
            scratch_shapes=[pltpu.VMEM((8, LANES), jnp.float32)],
        ),
        compiler_params=pltpu.CompilerParams(
            dimension_semantics=("parallel", "arbitrary"),
        ),
        cost_estimate=pl.CostEstimate(
            flops=8 * n_elems,
            transcendentals=2 * n_elems,
            bytes_accessed=in_bytes + NUM_CORES * 8 * LANES * 4,
        ),
    )(pred2d, label2d)

    # Tiny final combine (2*8*128 values) + mean scaling in plain JAX.
    return jnp.sum(partials) * jnp.float32(1.0 / n_elems)


if __name__ == "__main__":
    key = jax.random.PRNGKey(0)
    k1, k2 = jax.random.split(key)

    # Small NCHW-shaped inputs; pred in (0,1) like sigmoid outputs, label in {0,1}.
    shape = (2, 4, 16, 16)
    pred = jax.nn.sigmoid(jax.random.normal(k1, shape, dtype=jnp.float32))
    label = (jax.random.uniform(k2, shape, dtype=jnp.float32) > 0.5).astype(jnp.float32)

    loss = bce_loss(pred, label)
    jax.block_until_ready(loss)

    # Reference check (plain JAX) for sanity.
    ref = jnp.mean(-(label * jnp.log(pred) + (1.0 - label) * jnp.log(1.0 - pred)))
    assert jnp.allclose(loss, ref, rtol=1e-5, atol=1e-6), (loss, ref)

    print("KERNEL_OK")
</pallas_src>

<mosaic_0001>
module attributes {stable_mosaic.version = 11 : i64} {
  func.func @kernel(%arg0: i32, %arg1: i32, %arg2: memref<16x128xf32, #tpu.memory_space<vmem>>, %arg3: memref<16x128xf32, #tpu.memory_space<vmem>>, %arg4: memref<1x8x128xf32, #tpu.memory_space<vmem>>, %arg5: memref<8x128xf32, #tpu.memory_space<vmem>>) attributes {dimension_semantics = [#tpu.dimension_semantics<parallel>, #tpu.dimension_semantics<arbitrary>], iteration_bounds = array<i64: 2, 1>, scalar_prefetch = 0 : i64, scratch_operands = 1 : i64, tpu.core_type = #tpu.core_type<tc>, window_params = [{transform_indices = @transform_0, window_bounds = array<i64: 16, 128>}, {transform_indices = @transform_1, window_bounds = array<i64: 16, 128>}, {transform_indices = @transform_2, window_bounds = array<i64: 1, 8, 128>}]} {
    %c0_i32 = arith.constant 0 : i32
    %0 = arith.cmpi eq, %arg1, %c0_i32 : i32
    %1 = arith.extui %0 : i1 to i32
    %c0_i32_0 = arith.constant 0 : i32
    %2 = arith.cmpi ne, %1, %c0_i32_0 : i32
    scf.if %2 {
      %cst_17 = arith.constant 0.000000e+00 : f32
      %42 = vector.broadcast %cst_17 : f32 to vector<8x128xf32>
      %c0_18 = arith.constant 0 : index
      %c0_19 = arith.constant 0 : index
      %43 = vector.load %arg5[%c0_18, %c0_19] : memref<8x128xf32, #tpu.memory_space<vmem>>, vector<8x128xf32>
      tpu.vector_store %arg5[%c0_18, %c0_19], %42 {strides = array<i32>} : memref<8x128xf32, #tpu.memory_space<vmem>>, vector<8x128xf32>,
    } else {
    }
    %c0 = arith.constant 0 : index
    %c0_1 = arith.constant 0 : index
    %3 = vector.load %arg2[%c0, %c0_1] : memref<16x128xf32, #tpu.memory_space<vmem>>, vector<16x128xf32>
    %c0_2 = arith.constant 0 : index
    %c0_3 = arith.constant 0 : index
    %4 = vector.load %arg3[%c0_2, %c0_3] : memref<16x128xf32, #tpu.memory_space<vmem>>, vector<16x128xf32>
    %5 = math.log %3 : vector<16x128xf32>
    %cst = arith.constant -1.000000e+02 : f32
    %6 = vector.broadcast %cst : f32 to vector<16x128xf32>
    %7 = arith.maximumf %5, %6 : vector<16x128xf32>
    %cst_4 = arith.constant 1.000000e+00 : f32
    %8 = vector.broadcast %cst_4 : f32 to vector<16x128xf32>
    %9 = arith.subf %8, %3 : vector<16x128xf32>
    %10 = math.log %9 : vector<16x128xf32>
    %cst_5 = arith.constant -1.000000e+02 : f32
    %11 = vector.broadcast %cst_5 : f32 to vector<16x128xf32>
    %12 = arith.maximumf %10, %11 : vector<16x128xf32>
    %13 = arith.mulf %4, %7 : vector<16x128xf32>
    %cst_6 = arith.constant 1.000000e+00 : f32
    %14 = vector.broadcast %cst_6 : f32 to vector<16x128xf32>
    %15 = arith.subf %14, %4 : vector<16x128xf32>
    %16 = arith.mulf %15, %12 : vector<16x128xf32>
    %17 = arith.addf %13, %16 : vector<16x128xf32>
    %cst_7 = arith.constant 0.000000e+00 : f32
    %18 = vector.broadcast %cst_7 : f32 to vector<16x128xf32>
    %19 = arith.subf %18, %17 : vector<16x128xf32>
    %c1_i32 = arith.constant 1 : i32
    %20 = arith.muli %arg0, %c1_i32 : i32
    %21 = arith.addi %20, %arg1 : i32
    %c2048_i32 = arith.constant 2048 : i32
    %22 = arith.muli %21, %c2048_i32 : i32
    %23 = tpu.iota {dimensions = array<i32: 0>} : vector<16x128xi32>
    %24 = tpu.iota {dimensions = array<i32: 1>} : vector<16x128xi32>
    %c128_i32 = arith.constant 128 : i32
    %25 = vector.broadcast %c128_i32 : i32 to vector<16x128xi32>
    %26 = arith.muli %23, %25 : vector<16x128xi32>
    %27 = vector.broadcast %22 : i32 to vector<16x128xi32>
    %28 = arith.addi %27, %26 : vector<16x128xi32>
    %29 = arith.addi %28, %24 : vector<16x128xi32>
    %c2048_i32_8 = arith.constant 2048 : i32
    %30 = vector.broadcast %c2048_i32_8 : i32 to vector<16x128xi32>
    %31 = arith.cmpi slt, %29, %30 : vector<16x128xi32>
    %cst_9 = arith.constant 0.000000e+00 : f32
    %32 = vector.broadcast %cst_9 : f32 to vector<16x128xf32>
    %33 = arith.select %31, %19, %32 : vector<16x128xi1>, vector<16x128xf32>
    %c0_10 = arith.constant 0 : index
    %c0_11 = arith.constant 0 : index
    %34 = vector.load %arg5[%c0_10, %c0_11] : memref<8x128xf32, #tpu.memory_space<vmem>>, vector<8x128xf32>
    %35 = vector.shape_cast %33 : vector<16x128xf32> to vector<2x8x128xf32>
    %cst_12 = arith.constant dense<0.000000e+00> : vector<8x128xf32>
    %36 = vector.multi_reduction <add>, %35, %cst_12 [0] : vector<2x8x128xf32> to vector<8x128xf32>
    %37 = arith.addf %34, %36 : vector<8x128xf32>
    %c0_13 = arith.constant 0 : index
    %c0_14 = arith.constant 0 : index
    %38 = vector.load %arg5[%c0_13, %c0_14] : memref<8x128xf32, #tpu.memory_space<vmem>>, vector<8x128xf32>
    tpu.vector_store %arg5[%c0_13, %c0_14], %37 {strides = array<i32>} : memref<8x128xf32, #tpu.memory_space<vmem>>, vector<8x128xf32>,
    %c0_i32_15 = arith.constant 0 : i32
    %39 = arith.cmpi eq, %arg1, %c0_i32_15 : i32
    %40 = arith.extui %39 : i1 to i32
    %c0_i32_16 = arith.constant 0 : i32
    %41 = arith.cmpi ne, %40, %c0_i32_16 : i32
    scf.if %41 {
      %c0_17 = arith.constant 0 : index
      %c0_18 = arith.constant 0 : index
      %42 = vector.load %arg5[%c0_17, %c0_18] : memref<8x128xf32, #tpu.memory_space<vmem>>, vector<8x128xf32>
      %43 = vector.shape_cast %42 : vector<8x128xf32> to vector<1x8x128xf32>
      %c0_19 = arith.constant 0 : index
      %c0_20 = arith.constant 0 : index
      %c0_21 = arith.constant 0 : index
      %44 = vector.load %arg4[%c0_19, %c0_20, %c0_21] : memref<1x8x128xf32, #tpu.memory_space<vmem>>, vector<1x8x128xf32>
      tpu.vector_store %arg4[%c0_19, %c0_20, %c0_21], %43 {strides = array<i32>} : memref<1x8x128xf32, #tpu.memory_space<vmem>>, vector<1x8x128xf32>,
    } else {
    }
    return
  }
  func.func @transform_0(%arg0: i32, %arg1: i32) -> (i32, i32) {
    %c1_i32 = arith.constant 1 : i32
    %0 = arith.muli %arg0, %c1_i32 : i32
    %1 = arith.addi %0, %arg1 : i32
    %c0_i32 = arith.constant 0 : i32
    %2 = arith.minsi %1, %c0_i32 : i32
    %c0_i32_0 = arith.constant 0 : i32
    %c0_i32_1 = arith.constant 0 : i32
    return %2, %c0_i32_0 : i32, i32
  }
  func.func @transform_1(%arg0: i32, %arg1: i32) -> (i32, i32) {
    %c1_i32 = arith.constant 1 : i32
    %0 = arith.muli %arg0, %c1_i32 : i32
    %1 = arith.addi %0, %arg1 : i32
    %c0_i32 = arith.constant 0 : i32
    %2 = arith.minsi %1, %c0_i32 : i32
    %c0_i32_0 = arith.constant 0 : i32
    %c0_i32_1 = arith.constant 0 : i32
    return %2, %c0_i32_0 : i32, i32
  }
  func.func @transform_2(%arg0: i32, %arg1: i32) -> (i32, i32, i32) {
    %c0_i32 = arith.constant 0 : i32
    %c0_i32_0 = arith.constant 0 : i32
    %c0_i32_1 = arith.constant 0 : i32
    return %arg0, %c0_i32, %c0_i32_0 : i32, i32, i32
  }
}

</mosaic_0001>

<bundles_post_ra>
// kernel: tpu_custom_call.1
= control target key start
LH: loop header
LB: loop body
LE: loop exit
PB: predicated region body
PF: predicated region fallthrough
CT: control target
= control target key end

     0   :  { %7 = vsyncpa [#allocation4], 0  ;;  %s934_s0 = inlined_call_operand.hbm [shape: f32[16,128], index: 0, kind: input, shape index: {}]   ;;  %s935_s1 = inlined_call_operand.hbm [shape: f32[16,128], index: 1, kind: input, shape index: {}]   ;;  %s936_s2 = inlined_call_operand.hbm [shape: f32[2,8,128], index: 2, kind: output, shape index: {}]  }
   0x1   :  { %9 = vsyncpa [#allocation4 + $0x1], 0 }
   0x2   :  { %10 = vsyncpa [#allocation7], 0 }
   0x3   :  { %12 = vsyncpa [#allocation7 + $0x1], 0 }
   0x4   :  { %13 = vsyncpa [#allocation5], 0 }
   0x5   :  { %15 = vsyncpa [#allocation5 + $0x1], 0  ;;  %s726_s9 = smov 0   ;;  %s728_s10 = smov 0  }
   0x6   :  { %s730_s11 = smov 0   ;;  %s732_s12 = smov 0  }
   0x7   :  { %s734_s13 = smov 0   ;;  %s736_s14 = smov 0  }
   0x8   :  { %s738_s15 = smov 0   ;;  %s740_s16 = smov 0  }
   0x9 LB: > { %s415_s17 = sadd.s32 4294967295, %s704_s16   ;;  %s416_s18 = sadd.s32 4294967294, %s704_s16   ;;  %s704_s16 = sphi %s740_s16, %s21_s16   ;;  %s700_s15 = sphi %s738_s15, %s955_s15   ;;  %s696_s14 = sphi %s736_s14, %s954_s14   ;;  %s692_s13 = sphi %s734_s13, %s924_s13   ;;  %s688_s12 = sphi %s732_s12, %s953_s12   ;;  %s684_s11 = sphi %s730_s11, %s952_s11   ;;  %s680_s10 = sphi %s728_s10, %s951_s10   ;;  %s676_s9 = sphi %s726_s9, %s950_s9  }
   0xa   : > { %s33_s19 = sadd.s32 1, %s700_s15  ;;  %p673_p1 = scmp.ne.s32.totalorder %s692_s13, 0 }
   0xb   : > { %p35_p0 = scmp.ge.s32.totalorder %s33_s19, 2  ;;  %p54_p2 = scmp.eq.s32.totalorder %s704_s16, 0 }
   0xc   : > { %p59_p3 = scmp.ne.s32.totalorder %s692_s13, %s688_s12  ;;  %p60_p5 = scmp.eq.s32.totalorder %s415_s17, 0 }
   0xd   : > { %s957_s19 = smov (%p35_p0, %s33_s19), 0  ;;  %p772_p4 = por %p673_p1, %p54_p2 }
   0xe   : > { %p776_p6 = por %p60_p5, %p59_p3  ;;  %s101_s22 = ssub.s32 %s700_s15, %s957_s19 }
   0xf   : > { %p102_p7 = scmp.eq.s32.totalorder %s101_s22, 0  ;;  %s104_s23 = sadd.s32 1, %s684_s11 }
  0x10   : > { %s940_s21 = scalar_select %p776_p6, 1, 0 }
  0x11   : > { %s784_s24 = scalar_select %p102_p7, %s684_s11, %s104_s23  }
  0x12   : > { %p114_p8 = scmp.ne.s32.totalorder %s684_s11, %s680_s10  ;;  %p115_p9 = scmp.eq.s32.totalorder %s415_s17, 1 }
  0x13   : > { %p120_p10 = scmp.ne.s32.totalorder %s680_s10, %s676_s9  ;;  %p121_p11 = scmp.eq.s32.totalorder %s416_s18, 1 }
  0x14   : > { %p790_p12 = por %p115_p9, %p114_p8  ;;  %p453_p1 = scmp.lt.s32.totalorder %s704_s16, 2 }
  0x15   : > { %p795_p0 = por %p121_p11, %p120_p10  ;;  %s706_s27 = smov [#allocation3]  }
  0x16   : > { %s941_s25 = scalar_select %p790_p12, 1, 0 }
  0x17   : > { %s942_s26 = scalar_select %p795_p0, 1, 0 }
  0x18   : > { %s155_s28 = sshll.u32 %s706_s27, 4  ;;  %p802_p2 = pnand %p453_p1, %p772_p4  ;;  %s156_s28 = int_to_ptr.vmem [resolvable:$true] %s155_s28 }
  0x19   : > { %s537_s4 = scalar_lea.hbm %s934_s0, 256 }
  0x1a   : > { %p538_p3 = scmp.ne.s32.totalorder %s934_s0, %s537_s4  ;;  %p539_p5 = pneg %p802_p2 }
  0x1b   : > { %p544_p8 = scmp.lt.u32.totalorder %s537_s4, %s537_s4  ;;  %p546_p9 = scmp.lt.u32.totalorder %s537_s4, %s934_s0 }
  0x1c   : > { %p540_p7 = pnand %p539_p5, %p538_p3 }
  0x1d   : > { %p547_p10 = por %p546_p9, %p544_p8 }
  0x1e   : > { %p541_p4 = pneg %p540_p7 }
  0x20   : > { %p548_p11 = pnand %p547_p10, %p541_p4 }
  0x22   : > { %551 = shalt.err (!%p548_p11)
}
  0x23   : > { %s552_s12 = scalar_lea.vmem %s156_s28, 256  ;;  %s559_s17 = scalar_lea.vmem %s156_s28, 512 }
  0x24   : > { %p553_p1 = scmp.ne.s32.totalorder %s156_s28, %s552_s12  ;;  %p560_p12 = scmp.lt.s32.totalorder %s156_s28, %s156_s28 }
  0x25   : > { %p561_p6 = scmp.lt.s32.totalorder %s559_s17, %s552_s12 }
  0x26   : > { %p555_p13 = pnand %p553_p1, %p539_p5 }
  0x27   : > { %p562_p3 = por %p561_p6, %p560_p12 }
  0x28   : > { %p556_p0 = pneg %p555_p13 }
  0x2a   : > { %p563_p7 = pnand %p562_p3, %p556_p0 }
  0x2c   : > { %566 = shalt.err (!%p563_p7)
}
  0x2d   : > { %s707_s18 = smov 128   ;;  %s708_s20 = smov 8  }
  0x2e   : > { %445 = dma.hbm_to_vmem [thread:$0]  (!%p802_p2), %s934_s0, 256, %s156_s28, [#allocation4], %s707_s18, %s707_s18, %s708_s20  }
  0x2f   : > { %p425_p13 = scmp.ge.s32.totalorder %s704_s16, 1  ;;  %p187_p4 = scmp.lt.s32.totalorder %s704_s16, 3 }
  0x30   : > { %s709_s30 = smov [#allocation6]   ;;  %s567_s6 = scalar_lea.hbm %s935_s1, 256 }
  0x31   : > { %p833_p8 = pnand %p425_p13, %p187_p4  ;;  %s179_s3 = sshll.u32 %s709_s30, 4  ;;  %s180_s3 = int_to_ptr.vmem [resolvable:$true] %s179_s3 }
  0x32   : > { %p568_p6 = scmp.ne.s32.totalorder %s935_s1, %s567_s6  ;;  %p574_p9 = scmp.lt.u32.totalorder %s567_s6, %s567_s6 }
  0x33   : > { %s944_s27 = scalar_select %p833_p8, 1, 0 }
  0x34   : > { %p570_p12 = pnand %p568_p6, %p539_p5  ;;  %p576_p10 = scmp.lt.u32.totalorder %s567_s6, %s935_s1 }
  0x36   : > { %p571_p0 = pneg %p570_p12  ;;  %p577_p11 = por %p576_p10, %p574_p9 }
  0x38   : > { %p578_p1 = pnand %p577_p11, %p571_p0 }
  0x3a   : > { %581 = shalt.err (!%p578_p1)
}
  0x3b   : > { %s582_s17 = scalar_lea.vmem %s180_s3, 256  ;;  %s589_s22 = scalar_lea.vmem %s180_s3, 512 }
  0x3c   : > { %p583_p3 = scmp.ne.s32.totalorder %s180_s3, %s582_s17  ;;  %p590_p4 = scmp.lt.s32.totalorder %s180_s3, %s180_s3 }
  0x3d   : > { %p591_p8 = scmp.lt.s32.totalorder %s589_s22, %s582_s17 }
  0x3e   : > { %p585_p7 = pnand %p583_p3, %p539_p5 }
  0x3f   : > { %p592_p6 = por %p591_p8, %p590_p4 }
  0x40   : > { %p586_p13 = pneg %p585_p7 }
  0x42   : > { %p593_p12 = pnand %p592_p6, %p586_p13 }
  0x44   : > { %596 = shalt.err (!%p593_p12)
}
  0x45   : > { %448 = dma.hbm_to_vmem [thread:$0]  (!%p802_p2), %s935_s1, 256, %s180_s3, [#allocation7], %s707_s18, %s707_s18, %s708_s20  }
  0x46   : > { %p945_p0 = scmp.ne.s32.totalorder %s944_s27, 0 }
  0x47   : > { %s193_s4 = sand.u32 (!%p945_p0), 1, %s692_s13   ;;  %p946_p5 = scmp.ne.s32.totalorder (!%p945_p0), %s940_s21, 0 }
  0x48   : > { %191 = sbr.rel (%p945_p0) target bundleno = 124 (0x7c), region = 28  ;;  %s426_s5 = sshll.u32 (!%p945_p0), %s193_s4, 4 }
  0x49   : > { %s194_s6 = scalar_lea.sflag (!%p945_p0), [#allocation4], %s193_s4  ;;  %s197_s7 = scalar_lea.vmem (!%p945_p0), [#allocation3], %s426_s5 }
  0x4f   : > { %662 = dma.done.wait (%p946_p5), %s194_s6, 256  }
  0x50   : > { %664 = vsyncadd (%p946_p5), %s194_s6, 4294967040  ;;  %s203_s29 = scalar_lea.sflag [#allocation7], %s193_s4  ;;  %s206_s8 = scalar_lea.vmem [#allocation6], %s426_s5 }
  0x51   : > { %666 = dma.done.wait (%p946_p5), %s203_s29, 256  }
  0x52   : > { %668 = vsyncadd (%p946_p5), %s203_s29, 4294967040  ;;  %v275_v0 = vlaneseq  ;;  %v245_v1 = vld [vmem:[%s197_s7] sm:$0xff]  ;;  %v246_v2 = vld [vmem:[%s197_s7 + $0x8] sm:$0xff]  ;;  %s429_s18 = sshll.u32 %s696_s14, 11  ;;  %s229_s21 = sand.u32 1, %s680_s10  }
  0x53   : > { %529 = vlog2.f32 %v245_v1  ;;  %v255_v3 = vsub.f32 1.0, %v245_v1  ;;  %v256_v4 = vsub.f32 1.0, %v246_v2  ;;  %v282_v9 = vstv %s429_s18  ;;  %v247_v11 = vld [vmem:[%s206_s8] sm:$0xff]  ;;  %v248_v13 = vld [vmem:[%s206_s8 + $0x8] sm:$0xff]  ;;  %s428_s20 = sshll.u32 %s229_s21, 3  ;;  %s431_s28 = sshll.u32 %s696_s14, 7 }
  0x54   : > { %531 = vlog2.f32 %v246_v2  ;;  %v276_v5 = vshrl.u32 %v275_v0, 7  ;;  %v279_v17 = vand.u32 127, %v275_v0  ;;  %v265_v22 = vsub.f32 1.0, %v247_v11  ;;  %s231_s27 = scalar_lea.vmem [#allocation8], %s428_s20  ;;  %s881_s22 = scalar_lea.hbm %s936_s2, %s431_s28 }
  0x55   : > { %533 = vlog2.f32 %v255_v3  ;;  %v266_v26 = vsub.f32 1.0, %v248_v13  ;;  %s314_s3 = sshll.u32 %s231_s27, 4  ;;  %s301_s23 = scalar_lea.sflag [#allocation5], %s229_s21  ;;  %s876_s3 = int_to_ptr.vmem [resolvable:$true] %s314_s3 }
  0x56   : > { %535 = vlog2.f32 %v256_v4  ;;  %v277_v6 = vadd.s32 8, %v276_v5  ;;  %v280_v7 = vmul.u32 128, %v276_v5  ;;  %s597_s30 = scalar_lea.vmem %s876_s3, 128  ;;  %p947_p8 = scmp.ne.s32.totalorder %s941_s25, 0 }
  0x57   : > { %p598_p2 = scmp.ne.s32.totalorder %s876_s3, %s597_s30  ;;  %s710_s14 = smov [#allocation8]  }
  0x58   : > { %v281_v8 = vmul.u32 128, %v277_v6  ;;  %v283_v18 = vadd.s32 %v282_v9, %v280_v7  ;;  %s601_s4 = sshll.u32 %s710_s14, 4  ;;  %s602_s4 = int_to_ptr.vmem [resolvable:$false] %s601_s4 }
  0x59   : > { %p599_p9 = pnand %p598_p2, %p947_p8  ;;  %s603_s5 = scalar_lea.vmem %s602_s4, 256 }
  0x5a   : > { %v284_v23 = vadd.s32 %v282_v9, %v281_v8  ;;  %v285_v31 = vadd.s32 %v283_v18, %v279_v17  ;;  %p604_p11 = scmp.lt.s32.totalorder %s876_s3, %s602_s4  ;;  %p605_p1 = scmp.lt.s32.totalorder %s603_s5, %s597_s30 }
  0x5b   : > { %p600_p10 = pneg %p599_p9 }
  0x5c   : > { %v286_v33 = vadd.s32 %v284_v23, %v279_v17  ;;  %vm287_vm0 = vcmp.lt.s32.totalorder %v285_v31, 2048  ;;  %p606_p3 = por %p605_p1, %p604_p11 }
  0x5d   : > { %v530_v10 = vpop.eup %529 }
  0x5e   : > { %v532_v12 = vpop.eup %531  ;;  %v250_v14 = vmul.f32 0.6931472, %v530_v10  ;;  %vm288_vm1 = vcmp.lt.s32.totalorder %v286_v33, 2048  ;;  %p607_p7 = pnand %p606_p3, %p600_p10 }
  0x5f   : > { %v534_v15 = vpop.eup %533  ;;  %v252_v16 = vmul.f32 0.6931472, %v532_v12 }
  0x60   : > { %v536_v19 = vpop.eup %535  ;;  %v253_v20 = vmax.f32 %v250_v14, -100.0  ;;  %v258_v21 = vmul.f32 0.6931472, %v534_v15 }
  0x61   : > { %v254_v24 = vmax.f32 %v252_v16, -100.0  ;;  %v260_v25 = vmul.f32 0.6931472, %v536_v19 }
  0x62   : > { %v261_v27 = vmax.f32 %v258_v21, -100.0  ;;  %v263_v28 = vmul.f32 %v253_v20, %v247_v11 }
  0x63   : > { %v262_v29 = vmax.f32 %v260_v25, -100.0  ;;  %v264_v30 = vmul.f32 %v254_v24, %v248_v13 }
  0x64   : > { %v267_v32 = vmul.f32 %v265_v22, %v261_v27 }
  0x65   : > { %v268_v34 = vmul.f32 %v266_v26, %v262_v29 }
  0x66   : > { %v269_v35 = vadd.f32 %v267_v32, %v263_v28 }
  0x67   : > { %v270_v36 = vadd.f32 %v268_v34, %v264_v30 }
  0x68   : > { %v271_v37 = vsub.f32 0.0, %v269_v35 }
  0x69   : > { %v272_v38 = vsub.f32 0.0, %v270_v36 }
  0x6a   : > { %v289_v39 = vsel %vm287_vm0, %v271_v37, 0.0 }
  0x6b   : > { %v290_v40 = vsel %vm288_vm1, %v272_v38, 0.0 }
  0x6c   : > { %v292_v41 = vadd.f32 %v290_v40, %v289_v39 }
  0x6e   : > { %299 = vst [vmem:[%s231_s27] sm:$0xff] %v292_v41 }
  0x6f   : > { %610 = shalt.err (!%p607_p7)
}
  0x70   : > { %s611_s6 = scalar_lea.hbm %s881_s22, 128  ;;  %s615_s8 = scalar_lea.hbm %s936_s2, 256 }
  0x71   : > { %p612_p13 = scmp.ne.s32.totalorder %s881_s22, %s611_s6  ;;  %p616_p12 = scmp.lt.u32.totalorder %s881_s22, %s936_s2 }
  0x72   : > { %p617_p0 = scmp.lt.u32.totalorder %s615_s8, %s611_s6  ;;  %p619_p2 = scmp.lt.u32.totalorder %s611_s6, %s881_s22 }
  0x73   : > { %p613_p4 = pnand %p612_p13, %p947_p8 }
  0x74   : > { %p618_p5 = por %p617_p0, %p616_p12 }
  0x75   : > { %p614_p6 = pneg %p613_p4 }
  0x76   : > { %p620_p9 = por %p619_p2, %p618_p5 }
  0x78   : > { %p621_p10 = pnand %p620_p9, %p614_p6 }
  0x7a   : > { %624 = shalt.err (!%p621_p10)
}
  0x7b   : > { %440 = dma.vmem_to_hbm [thread:$0]  (%p947_p8), %s876_s3, 128, %s881_s22, %s301_s23  }
  0x7c PF: > { %s326_s20 = sand.u32 1, %s676_s9   ;;  %p948_p11 = scmp.ne.s32.totalorder %s942_s26, 0 }
  0x7d   : > { %p949_p1 = scmp.ge.s32.totalorder %s704_s16, 2  ;;  %s327_s27 = scalar_lea.sflag [#allocation5], %s326_s20 }
  0x7f   : > { %p450_p3 = pnand %p949_p1, %p948_p11 }
  0x81   : > { %670 = dma.done.wait (!%p450_p3), %s327_s27, 128  }
  0x82   : > { %672 = vsyncadd (!%p450_p3), %s327_s27, 4294967168  ;;  %s21_s16 = sadd.s32 1, %s704_s16   ;;  %s950_s9 = smov %s680_s10 }
  0x83   : > { %p18_p7 = scmp.ge.s32.totalorder %s21_s16, 4   ;;  %s951_s10 = smov %s684_s11 }
  0x84   : > { %s952_s11 = smov %s784_s24  ;;  %s953_s12 = smov %s692_s13 }
  0x85   : > { %s924_s13 = smov 0   ;;  %s954_s14 = smov %s700_s15 }
  0x86   : > { %s955_s15 = smov %s957_s19  ;;  %20 = sbr.rel (!%p18_p7) target bundleno = 9 (0x9), region = 94 }
  0x8d   :  { %332 = vsyncpa [#allocation4], 1 }
  0x8e   :  { %334 = vsyncpa [#allocation4 + $0x1], 1 }
  0x8f   :  { %335 = vsyncpa [#allocation7], 1 }
  0x90   :  { %337 = vsyncpa [#allocation7 + $0x1], 1 }
  0x91   :  { %338 = vsyncpa [#allocation5], 1 }
  0x92   :  { %340 = vsyncpa [#allocation5 + $0x1], 1 }

</bundles_post_ra>
